<compile_context>
chip_gen: v6e
topology: v6e:2x2x1
jax: 0.10.0
libtpu: 0.0.40
codegen_flags: <defaults>
</compile_context>

<pallas_src>
import jax
import jax.numpy as jnp
from jax.experimental import pallas as pl
from jax.experimental.pallas import tpu as pltpu


IN_DIM = 22 * 62            # 1364, forced by x.view(-1, 22*62)
N_HIDDEN_1 = 128
N_HIDDEN_2 = 64
OUT_DIM = 4 * 10            # 40, forced by x.view(-1, 4, 10)
BN_EPS = 1e-5
TILE_B_MAX = 1536           # f32 x tile ~8 MiB/step; double-buffered ~17 MiB
VMEM_LIMIT_BYTES = 48 * 1024 * 1024   # < v7x 64 MiB physical; >> default scoped


def _round_up(n, m):
    return ((n + m - 1) // m) * m


def _pick_tile_b(b):
    """Batch tile: multiple of 8 (or == b), capped, >=2 (even) grid steps."""
    if b <= 8:
        return b                                  # single exact block
    tile_b = min(TILE_B_MAX, _round_up(-(-b // 2), 8))
    steps = -(-b // tile_b)
    if steps > 1 and steps % 2 == 1:              # even step count for v7x 2-TC
        tile_b = min(tile_b, _round_up(-(-b // (steps + 1)), 8))
    return tile_b


def dnn_kernel(x_ref,
               w1_ref, t1_ref,
               w2_ref, t2_ref,
               w3_ref, b3_ref,
               o_ref):
    """Fused 3-layer MLP: relu(x@W1'+t1) -> relu(.@W2'+t2) -> .@W3+b3."""
    # In-kernel f32 -> bf16 cast of the streamed x tile (halves MXU cost; the
    # HBM read stays a single f32 pass).  K=1364 is ragged; Mosaic masks the
    # physical pad lanes out of the contraction.
    x = x_ref[...].astype(jnp.bfloat16)                                # (TB, 1364)

    # layer1: Linear with folded BN, then ReLU.
    h1 = jnp.dot(x, w1_ref[...], preferred_element_type=jnp.float32)  # (TB, 128)
    h1 = jnp.maximum(h1 + t1_ref[...], 0.0).astype(jnp.bfloat16)

    # layer2: Linear with folded BN, then ReLU.
    h2 = jnp.dot(h1, w2_ref[...], preferred_element_type=jnp.float32)  # (TB, 64)
    h2 = jnp.maximum(h2 + t2_ref[...], 0.0).astype(jnp.bfloat16)

    # layer3: Linear, stored at the true 40-wide output (masked store is cheap;
    # the kernel is DMA-bound on the x read, not store-slot-bound).
    y = jnp.dot(h2, w3_ref[...], preferred_element_type=jnp.float32)   # (TB, 40)
    o_ref[...] = (y + b3_ref[...]).astype(o_ref.dtype)


@jax.jit
def dnn_forward(x, kernel_params):
    """x: any shape with 1364 elements per sample (e.g. (B, 22, 62))."""
    (w1, t1, w2, t2, w3, b3) = kernel_params

    x2d = x.reshape(-1, IN_DIM)           # metadata-only for (B, 22, 62) inputs
    if x2d.dtype not in (jnp.float32, jnp.bfloat16):
        x2d = x2d.astype(jnp.float32)
    b = x2d.shape[0]

    tile_b = _pick_tile_b(b)
    grid = (pl.cdiv(b, tile_b),)

    mm_flops = IN_DIM * N_HIDDEN_1 + N_HIDDEN_1 * N_HIDDEN_2 + N_HIDDEN_2 * OUT_DIM
    cost = pl.CostEstimate(
        flops=2 * b * mm_flops,
        transcendentals=0,
        bytes_accessed=b * (IN_DIM + OUT_DIM) * 4 + 2 * mm_flops,
    )

    out = pl.pallas_call(
        dnn_kernel,
        out_shape=jax.ShapeDtypeStruct((b, OUT_DIM), jnp.float32),
        grid=grid,
        in_specs=[
            pl.BlockSpec((tile_b, IN_DIM), lambda i: (i, 0)),          # x streamed
            pl.BlockSpec((IN_DIM, N_HIDDEN_1), lambda i: (0, 0)),      # W1' resident
            pl.BlockSpec((1, N_HIDDEN_1), lambda i: (0, 0)),           # shift1
            pl.BlockSpec((N_HIDDEN_1, N_HIDDEN_2), lambda i: (0, 0)),  # W2' resident
            pl.BlockSpec((1, N_HIDDEN_2), lambda i: (0, 0)),           # shift2
            pl.BlockSpec((N_HIDDEN_2, OUT_DIM), lambda i: (0, 0)),     # W3  resident
            pl.BlockSpec((1, OUT_DIM), lambda i: (0, 0)),              # b3
        ],
        out_specs=pl.BlockSpec((tile_b, OUT_DIM), lambda i: (i, 0)),
        compiler_params=pltpu.CompilerParams(
            dimension_semantics=("parallel",),
            vmem_limit_bytes=VMEM_LIMIT_BYTES),
        cost_estimate=cost,
    )(x2d, w1, t1, w2, t2, w3, b3)

    return out.reshape(-1, 4, 10)


def make_raw_params(key):
    """Deterministic synthetic parameters matching the module's shapes (f32)."""
    ks = jax.random.split(key, 12)

    def lin(kw, kb, fan_in, fan_out):
        # PyTorch Linear stores W as (out, in); we keep (in, out) for x @ W.
        bound = 1.0 / jnp.sqrt(fan_in)
        w = jax.random.uniform(kw, (fan_in, fan_out), jnp.float32, -bound, bound)
        b = jax.random.uniform(kb, (1, fan_out), jnp.float32, -bound, bound)
        return w, b

    def bn(kg, kb, km, kv, h):
        gamma = 1.0 + 0.1 * jax.random.normal(kg, (1, h), jnp.float32)
        beta = 0.1 * jax.random.normal(kb, (1, h), jnp.float32)
        mean = 0.1 * jax.random.normal(km, (1, h), jnp.float32)
        var = jnp.abs(1.0 + 0.1 * jax.random.normal(kv, (1, h), jnp.float32))
        return gamma, beta, mean, var

    w1, b1 = lin(ks[0], ks[1], IN_DIM, N_HIDDEN_1)
    g1, be1, m1, v1 = bn(ks[2], ks[3], ks[4], ks[5], N_HIDDEN_1)
    w2, b2 = lin(ks[6], ks[7], N_HIDDEN_1, N_HIDDEN_2)
    g2, be2, m2, v2 = bn(ks[8], ks[9], ks[10], ks[11], N_HIDDEN_2)
    w3, b3 = lin(jax.random.fold_in(key, 100), jax.random.fold_in(key, 101),
                 N_HIDDEN_2, OUT_DIM)
    return (w1, b1, g1, be1, m1, v1, w2, b2, g2, be2, m2, v2, w3, b3)


def fold_params(raw):
    """Fold eval-mode BN into weights/shift; bf16 weights, f32 shifts."""
    (w1, b1, g1, be1, m1, v1, w2, b2, g2, be2, m2, v2, w3, b3) = raw

    s1 = g1 / jnp.sqrt(v1 + BN_EPS)                      # (1, H1)
    s2 = g2 / jnp.sqrt(v2 + BN_EPS)                      # (1, H2)

    w1f = (w1 * s1).astype(jnp.bfloat16)                 # column-wise scale
    t1 = ((b1 - m1) * s1 + be1).astype(jnp.float32)
    w2f = (w2 * s2).astype(jnp.bfloat16)
    t2 = ((b2 - m2) * s2 + be2).astype(jnp.float32)
    w3f = w3.astype(jnp.bfloat16)
    b3f = b3.astype(jnp.float32)

    return (w1f, t1, w2f, t2, w3f, b3f)


def reference_forward(x, raw):
    """Pure-JAX f32 reference of the eval-mode PyTorch forward."""
    (w1, b1, g1, be1, m1, v1, w2, b2, g2, be2, m2, v2, w3, b3) = raw
    h = x.reshape(-1, IN_DIM).astype(jnp.float32)
    z1 = h @ w1 + b1
    h = jnp.maximum((z1 - m1) * (g1 / jnp.sqrt(v1 + BN_EPS)) + be1, 0.0)
    z2 = h @ w2 + b2
    h = jnp.maximum((z2 - m2) * (g2 / jnp.sqrt(v2 + BN_EPS)) + be2, 0.0)
    y = h @ w3 + b3
    return y.reshape(-1, 4, 10)


if __name__ == "__main__":
    key = jax.random.PRNGKey(0)
    kx, kx2, kp = jax.random.split(key, 3)

    raw = make_raw_params(kp)
    kernel_params = fold_params(raw)

    # Case 1: tiny batch -> single exact block (grid of 1).
    batch = 2
    x = jax.random.normal(kx, (batch, 22, 62), jnp.float32)
    out = jax.block_until_ready(dnn_forward(x, kernel_params))
    ref = reference_forward(x, raw)
    assert out.shape == (batch, 4, 10), out.shape
    # bf16 matmul operands vs an f32 reference -> loose tolerance.
    assert jnp.allclose(out, ref, atol=5e-2, rtol=5e-2), (
        float(jnp.max(jnp.abs(out - ref))))

    # Case 2: batch that exercises the 2-step parallel grid and the partial
    # (masked) final block -- no padding copies in the wrapper.
    batch2 = 50
    x2 = jax.random.normal(kx2, (batch2, 22, 62), jnp.float32)
    out2 = jax.block_until_ready(dnn_forward(x2, kernel_params))
    ref2 = reference_forward(x2, raw)
    assert out2.shape == (batch2, 4, 10), out2.shape
    assert jnp.allclose(out2, ref2, atol=5e-2, rtol=5e-2), (
        float(jnp.max(jnp.abs(out2 - ref2))))

    print("KERNEL_OK")
</pallas_src>

<mosaic_0001>
module attributes {stable_mosaic.version = 11 : i64} {
  func.func @dnn_kernel(%arg0: i32, %arg1: memref<2x1364xf32, #tpu.memory_space<vmem>>, %arg2: memref<1364x128xbf16, #tpu.memory_space<vmem>>, %arg3: memref<1x128xf32, #tpu.memory_space<vmem>>, %arg4: memref<128x64xbf16, #tpu.memory_space<vmem>>, %arg5: memref<1x64xf32, #tpu.memory_space<vmem>>, %arg6: memref<64x40xbf16, #tpu.memory_space<vmem>>, %arg7: memref<1x40xf32, #tpu.memory_space<vmem>>, %arg8: memref<2x40xf32, #tpu.memory_space<vmem>>) attributes {dimension_semantics = [#tpu.dimension_semantics<parallel>], iteration_bounds = array<i64: 1>, scalar_prefetch = 0 : i64, scratch_operands = 0 : i64, tpu.core_type = #tpu.core_type<tc>, window_params = [{transform_indices = @transform_0, window_bounds = array<i64: 2, 1364>}, {pipeline_mode = #tpu.pipeline_mode<synchronous>, transform_indices = @transform_1, window_bounds = array<i64: 1364, 128>}, {pipeline_mode = #tpu.pipeline_mode<synchronous>, transform_indices = @transform_2, window_bounds = array<i64: 1, 128>}, {pipeline_mode = #tpu.pipeline_mode<synchronous>, transform_indices = @transform_3, window_bounds = array<i64: 128, 64>}, {pipeline_mode = #tpu.pipeline_mode<synchronous>, transform_indices = @transform_4, window_bounds = array<i64: 1, 64>}, {pipeline_mode = #tpu.pipeline_mode<synchronous>, transform_indices = @transform_5, window_bounds = array<i64: 64, 40>}, {pipeline_mode = #tpu.pipeline_mode<synchronous>, transform_indices = @transform_6, window_bounds = array<i64: 1, 40>}, {transform_indices = @transform_7, window_bounds = array<i64: 2, 40>}]} {
    %c0 = arith.constant 0 : index
    %c0_0 = arith.constant 0 : index
    %0 = vector.load %arg1[%c0, %c0_0] : memref<2x1364xf32, #tpu.memory_space<vmem>>, vector<2x1364xf32>
    %1 = arith.truncf %0 : vector<2x1364xf32> to vector<2x1364xbf16>
    %c0_1 = arith.constant 0 : index
    %c0_2 = arith.constant 0 : index
    %2 = vector.load %arg2[%c0_1, %c0_2] : memref<1364x128xbf16, #tpu.memory_space<vmem>>, vector<1364x128xbf16>
    %cst = arith.constant dense<0.000000e+00> : vector<2x128xf32>
    %3 = tpu.matmul %1, %2, %cst {dimension_numbers = #tpu.dot_dimension_numbers<[1], [0], [0], [1], [0, 0, 1, 1], [], []>} : vector<2x1364xbf16>, vector<1364x128xbf16>, vector<2x128xf32> -> vector<2x128xf32>
    %c0_3 = arith.constant 0 : index
    %c0_4 = arith.constant 0 : index
    %4 = vector.load %arg3[%c0_3, %c0_4] : memref<1x128xf32, #tpu.memory_space<vmem>>, vector<1x128xf32>
    %5 = vector.broadcast %4 : vector<1x128xf32> to vector<2x128xf32>
    %6 = arith.addf %3, %5 : vector<2x128xf32>
    %cst_5 = arith.constant 0.000000e+00 : f32
    %7 = vector.broadcast %cst_5 : f32 to vector<2x128xf32>
    %8 = arith.maximumf %6, %7 : vector<2x128xf32>
    %9 = arith.truncf %8 : vector<2x128xf32> to vector<2x128xbf16>
    %c0_6 = arith.constant 0 : index
    %c0_7 = arith.constant 0 : index
    %10 = vector.load %arg4[%c0_6, %c0_7] : memref<128x64xbf16, #tpu.memory_space<vmem>>, vector<128x64xbf16>
    %cst_8 = arith.constant dense<0.000000e+00> : vector<2x64xf32>
    %11 = tpu.matmul %9, %10, %cst_8 {dimension_numbers = #tpu.dot_dimension_numbers<[1], [0], [0], [1], [0, 0, 1, 1], [], []>} : vector<2x128xbf16>, vector<128x64xbf16>, vector<2x64xf32> -> vector<2x64xf32>
    %c0_9 = arith.constant 0 : index
    %c0_10 = arith.constant 0 : index
    %12 = vector.load %arg5[%c0_9, %c0_10] : memref<1x64xf32, #tpu.memory_space<vmem>>, vector<1x64xf32>
    %13 = vector.broadcast %12 : vector<1x64xf32> to vector<2x64xf32>
    %14 = arith.addf %11, %13 : vector<2x64xf32>
    %cst_11 = arith.constant 0.000000e+00 : f32
    %15 = vector.broadcast %cst_11 : f32 to vector<2x64xf32>
    %16 = arith.maximumf %14, %15 : vector<2x64xf32>
    %17 = arith.truncf %16 : vector<2x64xf32> to vector<2x64xbf16>
    %c0_12 = arith.constant 0 : index
    %c0_13 = arith.constant 0 : index
    %18 = vector.load %arg6[%c0_12, %c0_13] : memref<64x40xbf16, #tpu.memory_space<vmem>>, vector<64x40xbf16>
    %cst_14 = arith.constant dense<0.000000e+00> : vector<2x40xf32>
    %19 = tpu.matmul %17, %18, %cst_14 {dimension_numbers = #tpu.dot_dimension_numbers<[1], [0], [0], [1], [0, 0, 1, 1], [], []>} : vector<2x64xbf16>, vector<64x40xbf16>, vector<2x40xf32> -> vector<2x40xf32>
    %c0_15 = arith.constant 0 : index
    %c0_16 = arith.constant 0 : index
    %20 = vector.load %arg7[%c0_15, %c0_16] : memref<1x40xf32, #tpu.memory_space<vmem>>, vector<1x40xf32>
    %21 = vector.broadcast %20 : vector<1x40xf32> to vector<2x40xf32>
    %22 = arith.addf %19, %21 : vector<2x40xf32>
    %c0_17 = arith.constant 0 : index
    %c0_18 = arith.constant 0 : index
    %23 = vector.load %arg8[%c0_17, %c0_18] : memref<2x40xf32, #tpu.memory_space<vmem>>, vector<2x40xf32>
    tpu.vector_store %arg8[%c0_17, %c0_18], %22 {strides = array<i32>} : memref<2x40xf32, #tpu.memory_space<vmem>>, vector<2x40xf32>,
    return
  }
  func.func @transform_0(%arg0: i32) -> (i32, i32) {
    %c0_i32 = arith.constant 0 : i32
    %c0_i32_0 = arith.constant 0 : i32
    return %arg0, %c0_i32 : i32, i32
  }
  func.func @transform_1(%arg0: i32) -> (i32, i32) {
    %c0_i32 = arith.constant 0 : i32
    %c0_i32_0 = arith.constant 0 : i32
    %c0_i32_1 = arith.constant 0 : i32
    return %c0_i32, %c0_i32_0 : i32, i32
  }
  func.func @transform_2(%arg0: i32) -> (i32, i32) {
    %c0_i32 = arith.constant 0 : i32
    %c0_i32_0 = arith.constant 0 : i32
    %c0_i32_1 = arith.constant 0 : i32
    return %c0_i32, %c0_i32_0 : i32, i32
  }
  func.func @transform_3(%arg0: i32) -> (i32, i32) {
    %c0_i32 = arith.constant 0 : i32
    %c0_i32_0 = arith.constant 0 : i32
    %c0_i32_1 = arith.constant 0 : i32
    return %c0_i32, %c0_i32_0 : i32, i32
  }
  func.func @transform_4(%arg0: i32) -> (i32, i32) {
    %c0_i32 = arith.constant 0 : i32
    %c0_i32_0 = arith.constant 0 : i32
    %c0_i32_1 = arith.constant 0 : i32
    return %c0_i32, %c0_i32_0 : i32, i32
  }
  func.func @transform_5(%arg0: i32) -> (i32, i32) {
    %c0_i32 = arith.constant 0 : i32
    %c0_i32_0 = arith.constant 0 : i32
    %c0_i32_1 = arith.constant 0 : i32
    return %c0_i32, %c0_i32_0 : i32, i32
  }
  func.func @transform_6(%arg0: i32) -> (i32, i32) {
    %c0_i32 = arith.constant 0 : i32
    %c0_i32_0 = arith.constant 0 : i32
    %c0_i32_1 = arith.constant 0 : i32
    return %c0_i32, %c0_i32_0 : i32, i32
  }
  func.func @transform_7(%arg0: i32) -> (i32, i32) {
    %c0_i32 = arith.constant 0 : i32
    %c0_i32_0 = arith.constant 0 : i32
    return %arg0, %c0_i32 : i32, i32
  }
}

</mosaic_0001>

<bundles_post_ra>
// kernel: dnn_forward.1
= control target key start
LH: loop header
LB: loop body
LE: loop exit
PB: predicated region body
PF: predicated region fallthrough
CT: control target
= control target key end

     0   :  { %12 = vsyncpa [#allocation3], 0  ;;  %s1674_s24 = smov [#allocation2]   ;;  %s1812_s0 = inlined_call_operand.vmem [shape: f32[2,1364], index: 0, kind: input, shape index: {}]   ;;  %s1813_s1 = inlined_call_operand.hbm [shape: bf16[1364,128], index: 1, kind: input, shape index: {}]   ;;  %s1814_s2 = inlined_call_operand.vmem [shape: f32[1,128], index: 2, kind: input, shape index: {}]   ;;  %s1815_s3 = inlined_call_operand.vmem [shape: bf16[128,64], index: 3, kind: input, shape index: {}]   ;;  %s1816_s4 = inlined_call_operand.vmem [shape: f32[1,64], index: 4, kind: input, shape index: {}]   ;;  %s1817_s5 = inlined_call_operand.vmem [shape: bf16[64,40], index: 5, kind: input, shape index: {}]   ;;  %s1818_s6 = inlined_call_operand.vmem [shape: f32[1,40], index: 6, kind: input, shape index: {}]   ;;  %s1819_s7 = inlined_call_operand.vmem [shape: f32[2,40], index: 7, kind: output, shape index: {}]  }
   0x1   :  { %s20_s25 = sshll.u32 %s1674_s24, 4  ;;  %s21_s25 = int_to_ptr.vmem [resolvable:$true] %s20_s25 }
   0x2   :  { %s1660_s26 = scalar_lea.vmem %s21_s25, 10944  ;;  %p1665_p1 = scmp.lt.s32.totalorder %s21_s25, %s21_s25 }
   0x3   :  { %p1661_p0 = scmp.ne.s32.totalorder %s21_s25, %s1660_s26  ;;  %p1666_p2 = scmp.lt.s32.totalorder %s1660_s26, %s1660_s26 }
   0x5   :  { %p1667_p3 = por %p1666_p2, %p1665_p1 }
   0x7   :  { %p1668_p4 = pnand %p1667_p3, %p1661_p0 }
   0x9   :  { %1671 = shalt.err (!%p1668_p4)
}
   0xa   :  { %s1675_s27 = smov 64   ;;  %s1676_s28 = smov 4  }
   0xb   :  { %26 = dma.hbm_to_vmem [thread:$0]  %s1813_s1, 10944, %s21_s25, [#allocation3], %s1675_s27, %s1675_s27, %s1676_s28  }
   0xc   :  { %1672 = dma.done.wait [#allocation3], 10944  }
   0xd   :  { %1673 = vsyncadd [#allocation3], 4294956352  ;;  %v1551_v0 = vld [vmem:[#allocation2 + $0x78] sm:$0xff]   ;;  %v1555_v4 = vld [vmem:[#allocation2 + $0x70] sm:$0xff]   ;;  %v1677_v21 = vmov 1983009808   ;;  %v51_v23 = vlaneseq }
   0xe   :  { %v1552_v1 = vld [vmem:[#allocation2 + $0x38] sm:$0xff]   ;;  %1366 = vmatprep.subr.bf16.mxu0 %v1551_v0  ;;  %v1556_v5 = vld [vmem:[#allocation2 + $0x30] sm:$0xff]   ;;  %v1559_v8 = vld [vmem:[#allocation2 + $0x68] sm:$0xff]   ;;  %v49_v22 = vunpack.c.l.s4 %v1677_v21  ;;  %vm814_vm0 = vcmask 1041408   ;;  %vm1679_vm1 = vmmov 0   ;;  %vm810_vm2 = vcmask 687104  }
   0xf   :  { %v1553_v2 = vld [vmem:[#allocation2 + $0xf8] sm:$0xff]   ;;  %1367 = vmatpush3.bf16.msra.mxu0 %v1552_v1  ;;  %v1557_v6 = vld [vmem:[#allocation2 + $0xf0] sm:$0xff]   ;;  %v1560_v9 = vld [vmem:[#allocation2 + $0x28] sm:$0xff]   ;;  %v52_v29 = vshrl.u32 %v51_v23, 7  ;;  %vm1212_vm3 = vcmask 523264   ;;  %vm1256_vm4 = vcmask 320512  }
  0x10   :  { %v1554_v3 = vld [vmem:[#allocation2 + $0xb8] sm:$0xff]   ;;  %1388 = vmatprep.subr.bf16.mxu1 %v1553_v2  ;;  %1368 = vmatprep.subr.bf16.mxu0 %v1555_v4  ;;  %v1558_v7 = vld [vmem:[#allocation2 + $0xb0] sm:$0xff]   ;;  %v1561_v10 = vld [vmem:[#allocation2 + $0xe8] sm:$0xff]   ;;  %v50_v28 = vunpack.c.0.s8 %v49_v22 }
  0x11   :  { %1389 = vmatpush3.bf16.msra.mxu1 %v1554_v3  ;;  %v1562_v11 = vld [vmem:[#allocation2 + $0xa8] sm:$0xff]   ;;  %v1563_v12 = vld [vmem:[#allocation2 + $0x60] sm:$0xff]   ;;  %v1567_v16 = vld [vmem:[#allocation2 + $0x58] sm:$0xff]  }
  0x12   :  { %1390 = vmatprep.subr.bf16.mxu1 %v1557_v6  ;;  %v1564_v13 = vld [vmem:[#allocation2 + $0x20] sm:$0xff]   ;;  %v1568_v17 = vld [vmem:[#allocation2 + $0x18] sm:$0xff]   ;;  %v1571_v20 = vld [vmem:[#allocation2 + $0x50] sm:$0xff]   ;;  %v1723_v34 = vsub.s32 %v50_v28, %v52_v29 }
  0x13   :  { %1369 = vmatpush3.bf16.msra.mxu0 %v1556_v5  ;;  %v1565_v14 = vld [vmem:[#allocation2 + $0xe0] sm:$0xff]   ;;  %v1569_v18 = vld [vmem:[#allocation2 + $0xd8] sm:$0xff]   ;;  %v1572_v24 = vld [vmem:[#allocation2 + $0x10] sm:$0xff]  }
  0x14   :  { %1370 = vmatprep.subr.bf16.mxu0 %v1559_v8  ;;  %v1566_v15 = vld [vmem:[#allocation2 + $0xa0] sm:$0xff]   ;;  %v1570_v19 = vld [vmem:[#allocation2 + $0x98] sm:$0xff]   ;;  %v1573_v25 = vld [vmem:[#allocation2 + $0xd0] sm:$0xff]  }
  0x15   :  { %1391 = vmatpush3.bf16.msra.mxu1 %v1558_v7  ;;  %v1574_v26 = vld [vmem:[#allocation2 + $0x90] sm:$0xff]   ;;  %v1575_v27 = vld [vmem:[#allocation2 + $0x48] sm:$0xff]   ;;  %v1579_v33 = vld [vmem:[#allocation2 + $0x40] sm:$0xff]  }
  0x16   :  { %1392 = vmatprep.subr.bf16.mxu1 %v1561_v10  ;;  %v1576_v30 = vld [vmem:[#allocation2 + $0x8] sm:$0xff]   ;;  %v1580_v35 = vld [vmem:[#allocation2] sm:$0xff]   ;;  %v1583_v41 = vld [vmem:[#allocation2 + $0x178] sm:$0xff]  }
  0x17   :  { %1371 = vmatpush3.bf16.msra.mxu0 %v1560_v9  ;;  %v1577_v31 = vld [vmem:[#allocation2 + $0xc8] sm:$0xff]   ;;  %v1581_v36 = vld [vmem:[#allocation2 + $0xc0] sm:$0xff]   ;;  %v1586_v45 = vld [vmem:[#allocation2 + $0x1f8] sm:$0xff]  }
  0x18   :  { %1372 = vmatprep.subr.bf16.mxu0 %v1563_v12  ;;  %v1578_v32 = vld [vmem:[#allocation2 + $0x88] sm:$0xff]   ;;  %v41_v37 = vld [vmem:[%s1812_s0] sm:$0xff]  ;;  %v1585_v48 = vld [vmem:[#allocation2 + $0x138] sm:$0xff]  }
  0x19   :  { %1393 = vmatpush3.bf16.msra.mxu1 %v1562_v11  ;;  %v54_v38 = vrot.slane %v41_v37, %v1723_v34  ;;  %v1582_v39 = vld [vmem:[#allocation2 + $0x80] sm:$0xff]   ;;  %v47_v40 = vcombine.high %v41_v37, %v41_v37  ;;  %v1588_v50 = vld [vmem:[#allocation2 + $0x170] sm:$0xff]   ;;  %v1587_v52 = vld [vmem:[#allocation2 + $0x1b8] sm:$0xff]  }
  0x1a   :  { %1394 = vmatprep.subr.bf16.mxu1 %v1565_v14  ;;  %v1590_v53 = vld [vmem:[#allocation2 + $0x1f0] sm:$0xff]   ;;  %v1592_v55 = vld [vmem:[#allocation2 + $0x168] sm:$0xff]   ;;  %v1596_v59 = vld [vmem:[#allocation2 + $0x160] sm:$0xff]  }
  0x1b   :  { %1373 = vmatpush3.bf16.msra.mxu0 %v1564_v13  ;;  %v62_v42 = vcombine.high %v54_v38, %v54_v38  ;;  %v61_v43 = vrot.slane %v47_v40, %v1723_v34  ;;  %v108_v44 = vpack.c.bf16 %v54_v38, %v54_v38  ;;  %v1589_v54 = vld [vmem:[#allocation2 + $0x130] sm:$0xff]   ;;  %v1594_v57 = vld [vmem:[#allocation2 + $0x1e8] sm:$0xff]   ;;  %v1598_v61 = vld [vmem:[#allocation2 + $0x1e0] sm:$0xff]  }
  0x1c   :  { %1374 = vmatprep.subr.bf16.mxu0 %v1567_v16  ;;  %v1591_v56 = vld [vmem:[#allocation2 + $0x1b0] sm:$0xff]   ;;  %v1593_v58 = vld [vmem:[#allocation2 + $0x128] sm:$0xff]   ;;  %v1597_v62 = vld [vmem:[#allocation2 + $0x120] sm:$0xff]  }
  0x1d   :  { %1395 = vmatpush3.bf16.msra.mxu1 %v1566_v15  ;;  %v109_v46 = vpack.c.bf16 %v62_v42, %v62_v42  ;;  %v63_v47 = vcombine.high %v61_v43, %v61_v43  ;;  %v110_v49 = vpack.c.bf16 %v61_v43, %v61_v43  ;;  %v1595_v60 = vld [vmem:[#allocation2 + $0x1a8] sm:$0xff]   ;;  %v1600_v63 = vld [vmem:[#allocation2 + $0x158] sm:$0xff]   ;;  %v1599_v0 = vld [vmem:[#allocation2 + $0x1a0] sm:$0xff]  }
  0x1e   :  { %1396 = vmatprep.subr.bf16.mxu1 %v1569_v18  ;;  %v1602_v1 = vld [vmem:[#allocation2 + $0x1d8] sm:$0xff]   ;;  %v1604_v3 = vld [vmem:[#allocation2 + $0x150] sm:$0xff]   ;;  %v1608_v7 = vld [vmem:[#allocation2 + $0x148] sm:$0xff]  }
  0x1f   :  { %1375 = vmatpush3.bf16.msra.mxu0 %v1568_v17  ;;  %850 = vmatprep.mubr.bf16.mxu0 %v109_v46  ;;  %v111_v51 = vpack.c.bf16 %v63_v47, %v63_v47  ;;  %v1601_v2 = vld [vmem:[#allocation2 + $0x118] sm:$0xff]   ;;  %v1606_v5 = vld [vmem:[#allocation2 + $0x1d0] sm:$0xff]   ;;  %v1610_v9 = vld [vmem:[#allocation2 + $0x1c8] sm:$0xff]  }
  0x20   :  { %1376 = vmatprep.subr.bf16.mxu0 %v1571_v20  ;;  %v1603_v4 = vld [vmem:[#allocation2 + $0x198] sm:$0xff]   ;;  %v1605_v6 = vld [vmem:[#allocation2 + $0x110] sm:$0xff]   ;;  %v1609_v10 = vld [vmem:[#allocation2 + $0x108] sm:$0xff]  }
  0x21   :  { %1397 = vmatpush3.bf16.msra.mxu1 %v1570_v19  ;;  %890 = vmatprep.mubr.bf16.mxu1 %v111_v51  ;;  %v1607_v8 = vld [vmem:[#allocation2 + $0x190] sm:$0xff]   ;;  %v1612_v11 = vld [vmem:[#allocation2 + $0x140] sm:$0xff]   ;;  %v1611_v12 = vld [vmem:[#allocation2 + $0x188] sm:$0xff]  }
  0x22   :  { %1398 = vmatprep.subr.bf16.mxu1 %v1573_v25  ;;  %v1614_v13 = vld [vmem:[#allocation2 + $0x1c0] sm:$0xff]   ;;  %v42_v14 = vld [vmem:[%s1812_s0 + $0x8] sm:$0xff]  ;;  %v1616_v18 = vld [vmem:[#allocation2 + $0x278] sm:$0xff]  }
  0x23   :  { %1377 = vmatpush3.bf16.msra.mxu0 %v1572_v24  ;;  %v1613_v15 = vld [vmem:[#allocation2 + $0x100] sm:$0xff]   ;;  %v71_v16 = vrot.slane %v42_v14, %v1723_v34  ;;  %v64_v17 = vcombine.high %v42_v14, %v42_v14  ;;  %v1618_v25 = vld [vmem:[#allocation2 + $0x238] sm:$0xff]   ;;  %v1620_v29 = vld [vmem:[#allocation2 + $0x230] sm:$0xff]  }
  0x24   :  { %1378 = vmatprep.subr.bf16.mxu0 %v1575_v27  ;;  %v1615_v20 = vld [vmem:[#allocation2 + $0x180] sm:$0xff]   ;;  %v1619_v27 = vld [vmem:[#allocation2 + $0x270] sm:$0xff]   ;;  %v1629_v38 = vld [vmem:[#allocation2 + $0x298] sm:$0xff]  }
  0x25   :  { %1399 = vmatpush3.bf16.msra.mxu1 %v1574_v26  ;;  %v79_v19 = vcombine.high %v71_v16, %v71_v16  ;;  %v78_v21 = vrot.slane %v64_v17, %v1723_v34  ;;  %v112_v22 = vpack.c.bf16 %v71_v16, %v71_v16  ;;  %v1624_v37 = vld [vmem:[#allocation2 + $0x260] sm:$0xff]   ;;  %v1627_v40 = vld [vmem:[#allocation2 + $0x258] sm:$0xff]   ;;  %v1630_v43 = vld [vmem:[#allocation2 + $0x250] sm:$0xff]  }
  0x26   :  { %1400 = vmatprep.subr.bf16.mxu1 %v1577_v31  ;;  %v1623_v31 = vld [vmem:[#allocation2 + $0x2a8] ss:$0 sps:$4 sm:$0x33]   ;;  %v1628_v42 = vld [vmem:[#allocation2 + $0x218] sm:$0xff]   ;;  %v43_v46 = vld [vmem:[%s1812_s0 + $0x10] sm:$0x3f] }
  0x27   :  { %1379 = vmatpush3.bf16.msra.mxu0 %v1576_v30  ;;  %v113_v23 = vpack.c.bf16 %v79_v19, %v79_v19  ;;  %v80_v24 = vcombine.high %v78_v21, %v78_v21  ;;  %v114_v26 = vpack.c.bf16 %v78_v21, %v78_v21  ;;  %v1678_v30 = vmov 0.0   ;;  %v1633_v47 = vld [vmem:[#allocation2 + $0x248] sm:$0xff]   ;;  %v1263_v21 = vld [vmem:[%s1814_s2] ss:$0 sm:$0xff] }
  0x28   :  { %1380 = vmatprep.subr.bf16.mxu0 %v1579_v33  ;;  %v816_v33 = vsel %vm814_vm0, %v1623_v31, 0 }
  0x29   :  { %1401 = vmatpush3.bf16.msra.mxu1 %v1578_v32  ;;  %v115_v28 = vpack.c.bf16 %v80_v24, %v80_v24  ;;  %v1621_v32 = vld [vmem:[#allocation2 + $0x268] sm:$0xff]  }
  0x2a   :  { %1402 = vmatprep.subr.bf16.mxu1 %v1581_v36  ;;  %v1622_v36 = vld [vmem:[#allocation2 + $0x228] sm:$0xff]  }
  0x2b   :  { %1381 = vmatpush3.bf16.msra.mxu0 %v1580_v35  ;;  %v1626_v35 = vld [vmem:[#allocation2 + $0x2a0] sm:$0xff]  }
  0x2c   :  { %1410 = vmatprep.subr.bf16.mxu0 %v1583_v41  ;;  %v1632_v41 = vld [vmem:[#allocation2 + $0x290] sm:$0xff]  }
  0x2d   :  { %1403 = vmatpush3.bf16.msra.mxu1 %v1582_v39  ;;  %v1625_v39 = vld [vmem:[#allocation2 + $0x220] sm:$0xff]  }
  0x2e   :  { %1432 = vmatprep.subr.bf16.mxu1 %v1586_v45  ;;  %851 = vmatmul.mubr.bf16.vlgmr.msra.gmra.mxu0 %v108_v44  ;;  %v1631_v44 = vld [vmem:[#allocation2 + $0x210] sm:$0xff]   ;;  %v1635_v45 = vld [vmem:[#allocation2 + $0x288] sm:$0xff]  }
  0x2f   :  { %1411 = vmatpush3.bf16.msra.mxu0 %v1585_v48  ;;  %930 = vmatprep.mubr.bf16.mxu0 %v113_v23  ;;  %v81_v48 = vcombine.high %v43_v46, %v43_v46 }
  0x30   :  { %891 = vmatmul.mubr.bf16.vlgmr.msra.gmra.mxu1 %v110_v49  ;;  %1412 = vmatprep.subr.bf16.mxu0 %v1588_v50  ;;  %v88_v49 = vrot.slane %v43_v46, %v1723_v34  ;;  %v1638_v50 = vld [vmem:[#allocation2 + $0x280] sm:$0xff]  }
  0x31   :  { %1433 = vmatpush3.bf16.msra.mxu1 %v1587_v52  ;;  %970 = vmatprep.mubr.bf16.mxu1 %v115_v28  ;;  %v95_v51 = vrot.slane %v81_v48, %v1723_v34  ;;  %v1351_v46 = vld [vmem:[%s1816_s4] ss:$0 sm:$0xff] }
  0x32   :  { %1434 = vmatprep.subr.bf16.mxu1 %v1590_v53  ;;  %v96_v52 = vcombine.high %v88_v49, %v88_v49  ;;  %v1634_v53 = vld [vmem:[#allocation2 + $0x208] sm:$0xff]   ;;  %v116_v34 = vpack.c.bf16 %v88_v49, %v88_v49 }
  0x33   :  { %1413 = vmatpush3.bf16.msra.mxu0 %v1589_v54  ;;  %v1636_v54 = vld [vmem:[#allocation2 + $0x240] sm:$0xff]  }
  0x34   :  { %1414 = vmatprep.subr.bf16.mxu0 %v1592_v55  ;;  %v117_v55 = vpack.c.bf16 %v96_v52, %v96_v52 }
  0x35   :  { %1435 = vmatpush3.bf16.msra.mxu1 %v1591_v56  ;;  %v118_v56 = vpack.c.bf16 %v95_v51, %v95_v51 }
  0x36   :  { %1436 = vmatprep.subr.bf16.mxu1 %v1594_v57  ;;  %v1637_v57 = vld [vmem:[#allocation2 + $0x200] sm:$0xff]  }
  0x37   :  { %1415 = vmatpush3.bf16.msra.mxu0 %v1593_v58  ;;  %v1640_v58 = vld [vmem:[%s1815_s3 + $0x38] sm:$0xff]  }
  0x38   :  { %1416 = vmatprep.subr.bf16.mxu0 %v1596_v59  ;;  %v1641_v59 = vld [vmem:[%s1815_s3 + $0x30] sm:$0xff]  }
  0x39   :  { %1437 = vmatpush3.bf16.msra.mxu1 %v1595_v60  ;;  %v1642_v60 = vld [vmem:[%s1815_s3 + $0x28] sm:$0xff]  }
  0x3a   :  { %1438 = vmatprep.subr.bf16.mxu1 %v1598_v61  ;;  %v1643_v61 = vld [vmem:[%s1815_s3 + $0x20] sm:$0xff]  }
  0x3b   :  { %1417 = vmatpush3.bf16.msra.mxu0 %v1597_v62  ;;  %v1644_v62 = vld [vmem:[%s1815_s3 + $0x18] sm:$0xff]  }
  0x3c   :  { %1418 = vmatprep.subr.bf16.mxu0 %v1600_v63  ;;  %v1645_v63 = vld [vmem:[%s1815_s3 + $0x10] sm:$0xff]  }
  0x3d   :  { %1439 = vmatpush3.bf16.msra.mxu1 %v1599_v0  ;;  %v1646_v0 = vld [vmem:[%s1815_s3 + $0x8] sm:$0xff]  }
  0x3e   :  { %1440 = vmatprep.subr.bf16.mxu1 %v1602_v1  ;;  %v1647_v1 = vld [vmem:[%s1815_s3] sm:$0xff]  }
  0x3f   :  { %1419 = vmatpush3.bf16.msra.mxu0 %v1601_v2  ;;  %v1648_v2 = vld [vmem:[%s1817_s5 + $0x18] sm:$0xff]  }
  0x40   :  { %1420 = vmatprep.subr.bf16.mxu0 %v1604_v3  ;;  %v1649_v3 = vld [vmem:[%s1817_s5 + $0x10] sm:$0xff]  }
  0x41   :  { %1441 = vmatpush3.bf16.msra.mxu1 %v1603_v4 }
  0x42   :  { %1442 = vmatprep.subr.bf16.mxu1 %v1606_v5 }
  0x43   :  { %1421 = vmatpush3.bf16.msra.mxu0 %v1605_v6 }
  0x44   :  { %1422 = vmatprep.subr.bf16.mxu0 %v1608_v7 }
  0x45   :  { %1443 = vmatpush3.bf16.msra.mxu1 %v1607_v8 }
  0x46   :  { %1444 = vmatprep.subr.bf16.mxu1 %v1610_v9 }
  0x47   :  { %1423 = vmatpush3.bf16.msra.mxu0 %v1609_v10 }
  0x48   :  { %1424 = vmatprep.subr.bf16.mxu0 %v1612_v11 }
  0x49   :  { %1445 = vmatpush3.bf16.msra.mxu1 %v1611_v12 }
  0x4a   :  { %1446 = vmatprep.subr.bf16.mxu1 %v1614_v13 }
  0x4b   :  { %1425 = vmatpush3.bf16.msra.mxu0 %v1613_v15 }
  0x4c   :  { %1454 = vmatprep.subr.bf16.mxu0 %v1616_v18 }
  0x4d   :  { %1447 = vmatpush3.bf16.msra.mxu1 %v1615_v20 }
  0x4e   :  { %931 = vmatmul.mubr.bf16.vlgmr.msra.gmra.mxu0 %v112_v22  ;;  %1497 = vmatprep.subr.bf16.mxu1 %v1678_v30 }
  0x4f   :  { %1455 = vmatpush3.bf16.msra.mxu0 %v1618_v25  ;;  %1010 = vmatprep.mubr.bf16.mxu0 %v117_v55 }
  0x50   :  { %971 = vmatmul.mubr.bf16.vlgmr.msra.gmra.mxu1 %v114_v26  ;;  %1456 = vmatprep.subr.bf16.mxu0 %v1619_v27 }
  0x51   :  { %1498 = vmatpush3.bf16.msra.mxu1 %v816_v33  ;;  %1509 = vmatprep.mubr.msk.bf16.mxu1 %vm1679_vm1, %v1678_v30 }
  0x52   :  { %1499 = vmatprep.subr.bf16.mxu1 %v1678_v30 }
  0x53   :  { %1457 = vmatpush3.bf16.msra.mxu0 %v1620_v29 }
  0x54   :  { %1458 = vmatprep.subr.bf16.mxu0 %v1621_v32 }
  0x55   :  { %1500 = vmatpush3.bf16.msra.mxu1 %v1626_v35 }
  0x56   :  { %1501 = vmatprep.subr.bf16.mxu1 %v1678_v30 }
  0x57   :  { %1459 = vmatpush3.bf16.msra.mxu0 %v1622_v36 }
  0x58   :  { %1460 = vmatprep.subr.bf16.mxu0 %v1624_v37 }
  0x59   :  { %1502 = vmatpush3.bf16.msra.mxu1 %v1629_v38 }
  0x5a   :  { %1503 = vmatprep.subr.bf16.mxu1 %v1678_v30 }
  0x5b   :  { %1461 = vmatpush3.bf16.msra.mxu0 %v1625_v39 }
  0x5c   :  { %1462 = vmatprep.subr.bf16.mxu0 %v1627_v40 }
  0x5d   :  { %1504 = vmatpush3.bf16.msra.mxu1 %v1632_v41 }
  0x5e   :  { %1505 = vmatprep.subr.bf16.mxu1 %v1678_v30 }
  0x5f   :  { %1463 = vmatpush3.bf16.msra.mxu0 %v1628_v42 }
  0x60   :  { %1464 = vmatprep.subr.bf16.mxu0 %v1630_v43 }
  0x61   :  { %1506 = vmatpush3.bf16.msra.mxu1 %v1635_v45  ;;  %v1651_v45 = vld [vmem:[%s1817_s5] sm:$0xff]  }
  0x62   :  { %1507 = vmatprep.subr.bf16.mxu1 %v1678_v30 }
  0x63   :  { %1465 = vmatpush3.bf16.msra.mxu0 %v1631_v44  ;;  %v1650_v44 = vld [vmem:[%s1817_s5 + $0x8] sm:$0xff]  }
  0x64   :  { %1466 = vmatprep.subr.bf16.mxu0 %v1633_v47 }
  0x65   :  { %1508 = vmatpush3.bf16.msra.mxu1 %v1638_v50 }
  0x66   :  { %1513 = vmatprep.subr.bf16.mxu1 %v1678_v30 }
  0x67   :  { %1467 = vmatpush3.bf16.msra.mxu0 %v1634_v53 }
  0x68   :  { %1468 = vmatprep.subr.bf16.mxu0 %v1636_v54  ;;  %1510 = vmatmul.mubr.msk.bf16.vlgmr.msra.gmra.mxu1 %vm810_vm2, %v118_v56 }
  0x69   :  { %1529 = vmatprep.mubr.msk.bf16.mxu1 %vm1679_vm1, %v1678_v30  ;;  %1514 = vmatpush3.bf16.msra.mxu1 %v1640_v58 }
  0x6a   :  { %1515 = vmatprep.subr.bf16.mxu1 %v1678_v30 }
  0x6b   :  { %1469 = vmatpush3.bf16.msra.mxu0 %v1637_v57 }
  0x6c   :  { %1533 = vmatprep.subr.bf16.mxu0 %v1678_v30 }
  0x6d   :  { %1516 = vmatpush3.bf16.msra.mxu1 %v1641_v59 }
  0x6e   :  { %1011 = vmatmul.mubr.bf16.vlgmr.msra.gmra.mxu0 %v116_v34  ;;  %1517 = vmatprep.subr.bf16.mxu1 %v1678_v30 }
  0x6f   :  { %1541 = vmatprep.mubr.msk.bf16.mxu0 %vm1679_vm1, %v1678_v30  ;;  %1534 = vmatpush3.bf16.msra.mxu0 %v1648_v2 }
  0x70   :  { %1535 = vmatprep.subr.bf16.mxu0 %v1678_v30 }
  0x71   :  { %1518 = vmatpush3.bf16.msra.mxu1 %v1642_v60 }
  0x72   :  { %1519 = vmatprep.subr.bf16.mxu1 %v1678_v30 }
  0x73   :  { %1536 = vmatpush3.bf16.msra.mxu0 %v1649_v3 }
  0x74   :  { %1537 = vmatprep.subr.bf16.mxu0 %v1678_v30 }
  0x75   :  { %1520 = vmatpush3.bf16.msra.mxu1 %v1643_v61 }
  0x76   :  { %1521 = vmatprep.subr.bf16.mxu1 %v1678_v30 }
  0x77   :  { %1538 = vmatpush3.bf16.msra.mxu0 %v1650_v44 }
  0x78   :  { %1539 = vmatprep.subr.bf16.mxu0 %v1678_v30 }
  0x79   :  { %1522 = vmatpush3.bf16.msra.mxu1 %v1644_v62 }
  0x7a   :  { %1523 = vmatprep.subr.bf16.mxu1 %v1678_v30 }
  0x7b   :  { %1540 = vmatpush3.bf16.msra.mxu0 %v1651_v45 }
  0x7d   :  { %1524 = vmatpush3.bf16.msra.mxu1 %v1645_v63 }
  0x7e   :  { %1525 = vmatprep.subr.bf16.mxu1 %v1678_v30 }
  0x81   :  { %1526 = vmatpush3.bf16.msra.mxu1 %v1646_v0 }
  0x82   :  { %1527 = vmatprep.subr.bf16.mxu1 %v1678_v30  ;;  %v1360_v30 = vld [vmem:[%s1818_s6] ss:$0 sm:$0xff] }
  0x85   :  { %1528 = vmatpush3.bf16.msra.mxu1 %v1647_v1 }
  0xee   :  { %v1382_v4 = vpop.f32.mrf.mxu0 }
  0xf0   :  { %v1383_v5 = vpop.f32.mrf.mxu0  ;;  %v1404_v6 = vpop.f32.mrf.mxu1 }
  0xf1   :  { %v1384_v20 = vadd.f32 %v1383_v5, %v1382_v4 }
  0xf2   :  { %v1385_v7 = vpop.f32.mrf.mxu0  ;;  %v1405_v8 = vpop.f32.mrf.mxu1 }
  0xf3   :  { %v853_v22 = vadd.f32 %v1384_v20, %v1263_v21  ;;  %v1406_v23 = vadd.f32 %v1405_v8, %v1404_v6 }
  0xf4   :  { %v1386_v9 = vpop.f32.mrf.mxu0  ;;  %v1407_v10 = vpop.f32.mrf.mxu1 }
  0xf5   :  { %v893_v27 = vadd.f32 %v1406_v23, %v853_v22 }
  0xf6   :  { %v1408_v11 = vpop.f32.mrf.mxu1 }
 0x10e   :  { %v1426_v12 = vpop.f32.mrf.mxu0 }
 0x110   :  { %v1427_v13 = vpop.f32.mrf.mxu0  ;;  %v1448_v14 = vpop.f32.mrf.mxu1 }
 0x111   :  { %v1428_v25 = vadd.f32 %v1427_v13, %v1426_v12 }
 0x112   :  { %v1429_v15 = vpop.f32.mrf.mxu0  ;;  %v1449_v16 = vpop.f32.mrf.mxu1 }
 0x113   :  { %v933_v29 = vadd.f32 %v1428_v25, %v893_v27  ;;  %v1450_v31 = vadd.f32 %v1449_v16, %v1448_v14 }
 0x114   :  { %v1430_v17 = vpop.f32.mrf.mxu0  ;;  %v1451_v18 = vpop.f32.mrf.mxu1 }
 0x115   :  { %v973_v36 = vadd.f32 %v1450_v31, %v933_v29 }
 0x116   :  { %v1452_v19 = vpop.f32.mrf.mxu1 }
 0x128   :  { %v1052_v24 = vpop.f32.mrf.mxu1 }
 0x12a   :  { %v1511_v26 = vpop.f32.mrf.mxu1 }
 0x12c   :  { %v1055_v28 = vpop.f32.mrf.mxu1 }
 0x12e   :  { %v1470_v32 = vpop.f32.mrf.mxu0  ;;  %v1512_v33 = vpop.f32.mrf.mxu1 }
 0x130   :  { %v1471_v35 = vpop.f32.mrf.mxu0 }
 0x131   :  { %v1472_v37 = vadd.f32 %v1471_v35, %v1470_v32 }
 0x132   :  { %v1473_v38 = vpop.f32.mrf.mxu0 }
 0x133   :  { %v1013_v39 = vadd.f32 %v1472_v37, %v973_v36 }
 0x134   :  { %v1474_v40 = vpop.f32.mrf.mxu0 }
 0x135   :  { %v1053_v41 = vadd.f32 %v1052_v24, %v1013_v39 }
 0x137   :  { %v1058_v42 = vmax.f32 %v1053_v41, 0.0 }
 0x139   :  { %v1059_v43 = vpack.c.bf16 %v1058_v42, %v1058_v42 }
 0x13b   :  { %1530 = vmatmul.mubr.bf16.vlgmr.msra.gmra.mxu1 %v1059_v43 }
 0x1fb   :  { %v1165_v47 = vpop.f32.mrf.mxu1 }
 0x1fc   :  { %v1166_v48 = vadd.f32 %v1351_v46, %v1165_v47 }
 0x1fd   :  { %v1531_v49 = vpop.f32.mrf.mxu1 }
 0x1fe   :  { %v1171_v50 = vmax.f32 %v1166_v48, 0.0 }
 0x1ff   :  { %v1168_v51 = vpop.f32.mrf.mxu1 }
 0x200   :  { %v1172_v52 = vpack.c.bf16 %v1171_v50, %v1171_v50 }
 0x201   :  { %v1532_v53 = vpop.f32.mrf.mxu1 }
 0x202   :  { %1542 = vmatmul.mubr.msk.bf16.vlgmr.msra.gmra.mxu0 %vm1212_vm3, %v1172_v52 }
 0x2c2   :  { %v1250_v54 = vpop.f32.mrf.mxu0 }
 0x2c3   :  { %v1251_v55 = vadd.f32 %v1360_v30, %v1250_v54 }
 0x2c4   :  { %v1543_v56 = vpop.f32.mrf.mxu0 }
 0x2c5   :  { %1257 = vst.msk [vmem:[%s1819_s7] sm:$0x3] %vm1256_vm4, %v1251_v55 }
 0x2c6   :  { %v1253_v57 = vpop.f32.mrf.mxu0 }
 0x2c8   :  { %v1544_v34 = vpop.f32.mrf.mxu0 }
 0x2c9   :  { %1262 = vsyncpa [#allocation3], 1 }

</bundles_post_ra>
